<compile_context>
chip_gen: v5e
topology: v5e:2x2
jax: 0.10.0
libtpu: 0.0.40
codegen_flags: <defaults>
</compile_context>

<pallas_src>
import functools

import jax
import jax.numpy as jnp
from jax.experimental import pallas as pl
from jax.experimental.pallas import tpu as pltpu


def stack_gated_cnn_kernel(x_ref, wab_ref, g1_ref, be1_ref, w1_ref, b1_ref,
                           w2_ref, b2_ref, g2_ref, be2_ref, o_ref,
                           *, kernel_size):
    """One (batch_block, layer) grid step.

    Blocks:
      x_ref, o_ref : (TB, L, H)      -- o_ref is the layer-resident activation
      wab_ref      : (1, K*H, 2*H)   -- fused conv weights [a | gate]
      w1/w2_ref    : (1, H, H)       -- FFN weights (in, out layout)
      g*/be*/b*_ref: (1, 1, H)       -- LayerNorm / bias vectors
    """
    li = pl.program_id(1)                       # layer index (arbitrary axis)
    K = kernel_size
    pad = (K - 1) // 2                          # odd K => 'same' padding
    TB, L, H = x_ref.shape
    R = TB * L

    # Layer 0: seed the resident activation (output block) with the input.
    @pl.when(li == 0)
    def _():
        o_ref[...] = x_ref[...]

    x3 = o_ref[...]                             # (TB, L, H) current activation
    x2 = x3.reshape(R, H)

    # ---- GatedCNN: zero-halo + K shifted windows -> one fused matmul ----
    if pad > 0:
        zpad = jnp.zeros((TB, pad, H), x3.dtype)
        xh = jnp.concatenate([zpad, x3, zpad], axis=1)      # (TB, L+K-1, H)
    else:
        xh = x3
    xs = jnp.concatenate([xh[:, dk:dk + L, :] for dk in range(K)], axis=-1)
    xs = xs.reshape(R, K * H)                                # (R, K*H)

    ab = jnp.dot(xs, wab_ref[0], preferred_element_type=jnp.float32)  # (R, 2H)
    a = ab[:, :H]
    b = ab[:, H:]
    h = a * jax.nn.sigmoid(b) + x2              # gate + residual

    # ---- LayerNorm after gcnn (biased variance, eps=1e-5) ----
    mu = jnp.mean(h, axis=-1, keepdims=True)
    var = jnp.mean((h - mu) ** 2, axis=-1, keepdims=True)
    hn = (h - mu) * jax.lax.rsqrt(var + 1e-5) * g1_ref[0] + be1_ref[0]

    # ---- Feed-forward + residual ----
    l1 = jnp.maximum(
        jnp.dot(hn, w1_ref[0], preferred_element_type=jnp.float32) + b1_ref[0],
        0.0)
    l2 = jnp.dot(l1, w2_ref[0], preferred_element_type=jnp.float32) + b2_ref[0]
    z = hn + l2

    # ---- LayerNorm after ff ----
    mu2 = jnp.mean(z, axis=-1, keepdims=True)
    var2 = jnp.mean((z - mu2) ** 2, axis=-1, keepdims=True)
    zn = (z - mu2) * jax.lax.rsqrt(var2 + 1e-5) * g2_ref[0] + be2_ref[0]

    # Write back; the output block stays resident across the layer axis, so
    # the next layer reads it, and only the last layer's value is flushed.
    o_ref[...] = zn.reshape(TB, L, H)


def stack_gated_cnn(x, packed_params, *, kernel_size, batch_block=None):
    """Run the whole StackGatedCNN forward in a single pallas_call."""
    B, L, H = x.shape
    wab, g1, be1, w1, b1, w2, b2, g2, be2 = packed_params
    NL = wab.shape[0]
    K = kernel_size
    assert wab.shape == (NL, K * H, 2 * H)

    # Pack several batch elements per grid step -> bigger 2-D tiles.
    if batch_block is None:
        batch_block = 1
        for d in range(B, 0, -1):
            if B % d == 0 and d * L <= 1024:
                batch_block = d
                break
    TB = batch_block
    assert B % TB == 0
    NB = B // TB

    def wspec(shape):
        nd = len(shape)
        return pl.BlockSpec((1,) + tuple(shape[1:]),
                            lambda bi, li, _nd=nd: (li,) + (0,) * (_nd - 1))

    # Advisory cost estimate (fused conv + FFN matmuls; sigmoid + 2 rsqrt/row).
    flops = NL * B * L * (4 * K * H * H + 4 * H * H)
    transcendentals = NL * B * L * (H + 2)
    bytes_accessed = 4 * (2 * B * L * H
                          + NB * NL * (2 * K * H * H + 2 * H * H + 6 * H))

    kernel = functools.partial(stack_gated_cnn_kernel, kernel_size=K)

    return pl.pallas_call(
        kernel,
        out_shape=jax.ShapeDtypeStruct((B, L, H), x.dtype),
        grid=(NB, NL),
        in_specs=[
            pl.BlockSpec((TB, L, H), lambda bi, li: (bi, 0, 0)),  # x
            wspec(wab.shape),                                     # fused conv W
            wspec(g1.shape), wspec(be1.shape),                    # LN1
            wspec(w1.shape), wspec(b1.shape),                     # FFN W1, b1
            wspec(w2.shape), wspec(b2.shape),                     # FFN W2, b2
            wspec(g2.shape), wspec(be2.shape),                    # LN2
        ],
        out_specs=pl.BlockSpec((TB, L, H), lambda bi, li: (bi, 0, 0)),
        compiler_params=pltpu.CompilerParams(
            dimension_semantics=("parallel", "arbitrary")),
        cost_estimate=pl.CostEstimate(
            flops=flops, transcendentals=transcendentals,
            bytes_accessed=bytes_accessed),
    )(x, wab, g1, be1, w1, b1, w2, b2, g2, be2)


# ----------------------------- parameters ----------------------------------

def init_torch_params(key, num_layers, H, K):
    """Per-layer params in PyTorch layouts (Conv1d (O,I,K), Linear (O,I))."""
    layers = []
    for _ in range(num_layers):
        key, k0, k1, k2, k3, k4, k5 = jax.random.split(key, 7)
        wa = jax.random.normal(k0, (H, H, K), jnp.float32) * 0.1
        wb = jax.random.normal(k1, (H, H, K), jnp.float32) * 0.1
        w1 = jax.random.normal(k2, (H, H), jnp.float32) * 0.1
        b1 = jax.random.normal(k3, (H,), jnp.float32) * 0.1
        w2 = jax.random.normal(k4, (H, H), jnp.float32) * 0.1
        b2 = jax.random.normal(k5, (H,), jnp.float32) * 0.1
        g1 = jnp.ones((H,), jnp.float32)
        be1 = jnp.zeros((H,), jnp.float32)
        g2 = jnp.ones((H,), jnp.float32)
        be2 = jnp.zeros((H,), jnp.float32)
        layers.append((wa, wb, w1, b1, w2, b2, g1, be1, g2, be2))
    return layers


def pack_params(torch_layers, H, K):
    """Convert PyTorch-layout params to kernel layouts, stacked over layers."""
    wabs, g1s, be1s, w1s, b1s, w2s, b2s, g2s, be2s = ([] for _ in range(9))
    for (wa, wb, w1, b1, w2, b2, g1, be1, g2, be2) in torch_layers:
        # Conv1d (O, I, K) -> (K, I, O) -> (K*H, H); fuse a|b along out dim.
        wa_k = jnp.transpose(wa, (2, 1, 0)).reshape(K * H, H)
        wb_k = jnp.transpose(wb, (2, 1, 0)).reshape(K * H, H)
        wabs.append(jnp.concatenate([wa_k, wb_k], axis=-1))   # (K*H, 2H)
        w1s.append(w1.T)
        b1s.append(b1.reshape(1, H))
        w2s.append(w2.T)
        b2s.append(b2.reshape(1, H))
        g1s.append(g1.reshape(1, H))
        be1s.append(be1.reshape(1, H))
        g2s.append(g2.reshape(1, H))
        be2s.append(be2.reshape(1, H))
    st = lambda xs: jnp.stack(xs)
    return (st(wabs), st(g1s), st(be1s), st(w1s), st(b1s),
            st(w2s), st(b2s), st(g2s), st(be2s))


# ----------------------------- reference -----------------------------------

def _layer_norm(x, g, b, eps=1e-5):
    mu = x.mean(-1, keepdims=True)
    var = ((x - mu) ** 2).mean(-1, keepdims=True)
    return (x - mu) * jax.lax.rsqrt(var + eps) * g + b


def ref_stack_gated_cnn(x, torch_layers, kernel_size):
    """Pure-JAX reference with the exact PyTorch module semantics."""
    K = kernel_size
    pad = (K - 1) // 2
    B, L, H = x.shape
    for (wa, wb, w1, b1, w2, b2, g1, be1, g2, be2) in torch_layers:
        xp = jnp.pad(x, ((0, 0), (pad, pad), (0, 0)))
        wins = jnp.stack([xp[:, dk:dk + L, :] for dk in range(K)], axis=2)
        a = jnp.einsum('btki,oik->bto', wins, wa)
        bg = jnp.einsum('btki,oik->bto', wins, wb)
        h = a * jax.nn.sigmoid(bg) + x
        hn = _layer_norm(h, g1, be1)
        l1 = jnp.maximum(hn @ w1.T + b1, 0.0)
        l2 = l1 @ w2.T + b2
        x = _layer_norm(hn + l2, g2, be2)
    return x


if __name__ == "__main__":
    # config: hidden_size=32, kernel_size=3 (odd -> 'same'), num_layers=2
    B, L, H, K, NUM_LAYERS = 2, 8, 32, 3, 2

    key = jax.random.PRNGKey(0)
    kx, kp = jax.random.split(key)
    x = jax.random.normal(kx, (B, L, H), jnp.float32)

    torch_layers = init_torch_params(kp, NUM_LAYERS, H, K)
    packed = pack_params(torch_layers, H, K)

    out = jax.block_until_ready(stack_gated_cnn(x, packed, kernel_size=K))

    ref = ref_stack_gated_cnn(x, torch_layers, K)
    assert out.shape == (B, L, H)
    assert jnp.allclose(out, ref, atol=1e-4, rtol=1e-4), "mismatch vs reference"

    print("KERNEL_OK")
</pallas_src>

<mosaic_0001>
module attributes {stable_mosaic.version = 11 : i64} {
  func.func @stack_gated_cnn_kernel(%arg0: i32, %arg1: i32, %arg2: memref<2x8x32xf32, #tpu.memory_space<vmem>>, %arg3: memref<1x96x64xf32, #tpu.memory_space<vmem>>, %arg4: memref<1x1x32xf32, #tpu.memory_space<vmem>>, %arg5: memref<1x1x32xf32, #tpu.memory_space<vmem>>, %arg6: memref<1x32x32xf32, #tpu.memory_space<vmem>>, %arg7: memref<1x1x32xf32, #tpu.memory_space<vmem>>, %arg8: memref<1x32x32xf32, #tpu.memory_space<vmem>>, %arg9: memref<1x1x32xf32, #tpu.memory_space<vmem>>, %arg10: memref<1x1x32xf32, #tpu.memory_space<vmem>>, %arg11: memref<1x1x32xf32, #tpu.memory_space<vmem>>, %arg12: memref<2x8x32xf32, #tpu.memory_space<vmem>>) attributes {dimension_semantics = [#tpu.dimension_semantics<parallel>, #tpu.dimension_semantics<arbitrary>], iteration_bounds = array<i64: 1, 2>, scalar_prefetch = 0 : i64, scratch_operands = 0 : i64, tpu.core_type = #tpu.core_type<tc>, window_params = [{transform_indices = @transform_0, window_bounds = array<i64: 2, 8, 32>}, {transform_indices = @transform_1, window_bounds = array<i64: 1, 96, 64>}, {transform_indices = @transform_2, window_bounds = array<i64: 1, 1, 32>}, {transform_indices = @transform_3, window_bounds = array<i64: 1, 1, 32>}, {transform_indices = @transform_4, window_bounds = array<i64: 1, 32, 32>}, {transform_indices = @transform_5, window_bounds = array<i64: 1, 1, 32>}, {transform_indices = @transform_6, window_bounds = array<i64: 1, 32, 32>}, {transform_indices = @transform_7, window_bounds = array<i64: 1, 1, 32>}, {transform_indices = @transform_8, window_bounds = array<i64: 1, 1, 32>}, {transform_indices = @transform_9, window_bounds = array<i64: 1, 1, 32>}, {transform_indices = @transform_10, window_bounds = array<i64: 2, 8, 32>}]} {
    %c0_i32 = arith.constant 0 : i32
    %0 = arith.cmpi eq, %arg1, %c0_i32 : i32
    %1 = arith.extui %0 : i1 to i32
    %c0_i32_0 = arith.constant 0 : i32
    %2 = arith.cmpi ne, %1, %c0_i32_0 : i32
    scf.if %2 {
      %c0_48 = arith.constant 0 : index
      %c0_49 = arith.constant 0 : index
      %c0_50 = arith.constant 0 : index
      %95 = vector.load %arg2[%c0_48, %c0_49, %c0_50] : memref<2x8x32xf32, #tpu.memory_space<vmem>>, vector<2x8x32xf32>
      %c0_51 = arith.constant 0 : index
      %c0_52 = arith.constant 0 : index
      %c0_53 = arith.constant 0 : index
      %96 = vector.load %arg12[%c0_51, %c0_52, %c0_53] : memref<2x8x32xf32, #tpu.memory_space<vmem>>, vector<2x8x32xf32>
      tpu.vector_store %arg12[%c0_51, %c0_52, %c0_53], %95 {strides = array<i32>} : memref<2x8x32xf32, #tpu.memory_space<vmem>>, vector<2x8x32xf32>,
    } else {
    }
    %c0 = arith.constant 0 : index
    %c0_1 = arith.constant 0 : index
    %c0_2 = arith.constant 0 : index
    %3 = vector.load %arg12[%c0, %c0_1, %c0_2] : memref<2x8x32xf32, #tpu.memory_space<vmem>>, vector<2x8x32xf32>
    %4 = vector.shape_cast %3 : vector<2x8x32xf32> to vector<16x32xf32>
    %cst = arith.constant 0.000000e+00 : f32
    %5 = vector.broadcast %cst : f32 to vector<2x1x32xf32>
    %6 = tpu.concatenate %5, %3, %5 in 1 : vector<2x1x32xf32>, vector<2x8x32xf32>, vector<2x1x32xf32> -> vector<2x10x32xf32>
    %7 = vector.extract_strided_slice %6 {offsets = [0, 0, 0], sizes = [2, 8, 32], strides = [1, 1, 1]} : vector<2x10x32xf32> to vector<2x8x32xf32>
    %8 = vector.extract_strided_slice %6 {offsets = [0, 1, 0], sizes = [2, 8, 32], strides = [1, 1, 1]} : vector<2x10x32xf32> to vector<2x8x32xf32>
    %9 = vector.extract_strided_slice %6 {offsets = [0, 2, 0], sizes = [2, 8, 32], strides = [1, 1, 1]} : vector<2x10x32xf32> to vector<2x8x32xf32>
    %10 = tpu.concatenate %7, %8, %9 in 2 : vector<2x8x32xf32>, vector<2x8x32xf32>, vector<2x8x32xf32> -> vector<2x8x96xf32>
    %11 = vector.shape_cast %10 : vector<2x8x96xf32> to vector<16x96xf32>
    %c0_3 = arith.constant 0 : index
    %c0_4 = arith.constant 0 : index
    %c0_5 = arith.constant 0 : index
    %12 = vector.load %arg3[%c0_3, %c0_4, %c0_5] : memref<1x96x64xf32, #tpu.memory_space<vmem>>, vector<1x96x64xf32>
    %13 = vector.shape_cast %12 : vector<1x96x64xf32> to vector<96x64xf32>
    %cst_6 = arith.constant dense<0.000000e+00> : vector<16x64xf32>
    %14 = tpu.matmul %11, %13, %cst_6 {dimension_numbers = #tpu.dot_dimension_numbers<[1], [0], [0], [1], [0, 0, 1, 1], [], []>} : vector<16x96xf32>, vector<96x64xf32>, vector<16x64xf32> -> vector<16x64xf32>
    %15 = vector.extract_strided_slice %14 {offsets = [0, 0], sizes = [16, 32], strides = [1, 1]} : vector<16x64xf32> to vector<16x32xf32>
    %16 = vector.extract_strided_slice %14 {offsets = [0, 32], sizes = [16, 32], strides = [1, 1]} : vector<16x64xf32> to vector<16x32xf32>
    %17 = arith.negf %16 : vector<16x32xf32>
    %18 = math.exp %17 : vector<16x32xf32>
    %cst_7 = arith.constant 1.000000e+00 : f32
    %19 = vector.broadcast %cst_7 : f32 to vector<16x32xf32>
    %20 = arith.addf %19, %18 : vector<16x32xf32>
    %21 = arith.divf %19, %20 : vector<16x32xf32>
    %22 = arith.mulf %15, %21 : vector<16x32xf32>
    %23 = arith.addf %22, %4 : vector<16x32xf32>
    %cst_8 = arith.constant dense<0.000000e+00> : vector<16xf32>
    %24 = vector.multi_reduction <add>, %23, %cst_8 [1] : vector<16x32xf32> to vector<16xf32>
    %25 = vector.shape_cast %24 : vector<16xf32> to vector<16x1xf32>
    %cst_9 = arith.constant 3.200000e+01 : f32
    %26 = vector.broadcast %cst_9 : f32 to vector<16x1xf32>
    %27 = arith.divf %25, %26 : vector<16x1xf32>
    %28 = vector.broadcast %27 : vector<16x1xf32> to vector<16x32xf32>
    %29 = arith.subf %23, %28 : vector<16x32xf32>
    %30 = arith.mulf %29, %29 : vector<16x32xf32>
    %cst_10 = arith.constant dense<0.000000e+00> : vector<16xf32>
    %31 = vector.multi_reduction <add>, %30, %cst_10 [1] : vector<16x32xf32> to vector<16xf32>
    %32 = vector.shape_cast %31 : vector<16xf32> to vector<16x1xf32>
    %cst_11 = arith.constant 3.200000e+01 : f32
    %33 = vector.broadcast %cst_11 : f32 to vector<16x1xf32>
    %34 = arith.divf %32, %33 : vector<16x1xf32>
    %35 = vector.broadcast %27 : vector<16x1xf32> to vector<16x32xf32>
    %36 = arith.subf %23, %35 : vector<16x32xf32>
    %cst_12 = arith.constant 9.99999974E-6 : f32
    %37 = vector.broadcast %cst_12 : f32 to vector<16x1xf32>
    %38 = arith.addf %34, %37 : vector<16x1xf32>
    %39 = math.rsqrt %38 : vector<16x1xf32>
    %40 = vector.broadcast %39 : vector<16x1xf32> to vector<16x32xf32>
    %41 = arith.mulf %36, %40 : vector<16x32xf32>
    %c0_13 = arith.constant 0 : index
    %c0_14 = arith.constant 0 : index
    %c0_15 = arith.constant 0 : index
    %42 = vector.load %arg4[%c0_13, %c0_14, %c0_15] : memref<1x1x32xf32, #tpu.memory_space<vmem>>, vector<1x1x32xf32>
    %43 = vector.shape_cast %42 : vector<1x1x32xf32> to vector<1x32xf32>
    %44 = vector.broadcast %43 : vector<1x32xf32> to vector<16x32xf32>
    %45 = arith.mulf %41, %44 : vector<16x32xf32>
    %c0_16 = arith.constant 0 : index
    %c0_17 = arith.constant 0 : index
    %c0_18 = arith.constant 0 : index
    %46 = vector.load %arg5[%c0_16, %c0_17, %c0_18] : memref<1x1x32xf32, #tpu.memory_space<vmem>>, vector<1x1x32xf32>
    %47 = vector.shape_cast %46 : vector<1x1x32xf32> to vector<1x32xf32>
    %48 = vector.broadcast %47 : vector<1x32xf32> to vector<16x32xf32>
    %49 = arith.addf %45, %48 : vector<16x32xf32>
    %c0_19 = arith.constant 0 : index
    %c0_20 = arith.constant 0 : index
    %c0_21 = arith.constant 0 : index
    %50 = vector.load %arg6[%c0_19, %c0_20, %c0_21] : memref<1x32x32xf32, #tpu.memory_space<vmem>>, vector<1x32x32xf32>
    %51 = vector.shape_cast %50 : vector<1x32x32xf32> to vector<32x32xf32>
    %cst_22 = arith.constant dense<0.000000e+00> : vector<16x32xf32>
    %52 = tpu.matmul %49, %51, %cst_22 {dimension_numbers = #tpu.dot_dimension_numbers<[1], [0], [0], [1], [0, 0, 1, 1], [], []>} : vector<16x32xf32>, vector<32x32xf32>, vector<16x32xf32> -> vector<16x32xf32>
    %c0_23 = arith.constant 0 : index
    %c0_24 = arith.constant 0 : index
    %c0_25 = arith.constant 0 : index
    %53 = vector.load %arg7[%c0_23, %c0_24, %c0_25] : memref<1x1x32xf32, #tpu.memory_space<vmem>>, vector<1x1x32xf32>
    %54 = vector.shape_cast %53 : vector<1x1x32xf32> to vector<1x32xf32>
    %55 = vector.broadcast %54 : vector<1x32xf32> to vector<16x32xf32>
    %56 = arith.addf %52, %55 : vector<16x32xf32>
    %cst_26 = arith.constant 0.000000e+00 : f32
    %57 = vector.broadcast %cst_26 : f32 to vector<16x32xf32>
    %58 = arith.maximumf %56, %57 : vector<16x32xf32>
    %c0_27 = arith.constant 0 : index
    %c0_28 = arith.constant 0 : index
    %c0_29 = arith.constant 0 : index
    %59 = vector.load %arg8[%c0_27, %c0_28, %c0_29] : memref<1x32x32xf32, #tpu.memory_space<vmem>>, vector<1x32x32xf32>
    %60 = vector.shape_cast %59 : vector<1x32x32xf32> to vector<32x32xf32>
    %cst_30 = arith.constant dense<0.000000e+00> : vector<16x32xf32>
    %61 = tpu.matmul %58, %60, %cst_30 {dimension_numbers = #tpu.dot_dimension_numbers<[1], [0], [0], [1], [0, 0, 1, 1], [], []>} : vector<16x32xf32>, vector<32x32xf32>, vector<16x32xf32> -> vector<16x32xf32>
    %c0_31 = arith.constant 0 : index
    %c0_32 = arith.constant 0 : index
    %c0_33 = arith.constant 0 : index
    %62 = vector.load %arg9[%c0_31, %c0_32, %c0_33] : memref<1x1x32xf32, #tpu.memory_space<vmem>>, vector<1x1x32xf32>
    %63 = vector.shape_cast %62 : vector<1x1x32xf32> to vector<1x32xf32>
    %64 = vector.broadcast %63 : vector<1x32xf32> to vector<16x32xf32>
    %65 = arith.addf %61, %64 : vector<16x32xf32>
    %66 = arith.addf %49, %65 : vector<16x32xf32>
    %cst_34 = arith.constant dense<0.000000e+00> : vector<16xf32>
    %67 = vector.multi_reduction <add>, %66, %cst_34 [1] : vector<16x32xf32> to vector<16xf32>
    %68 = vector.shape_cast %67 : vector<16xf32> to vector<16x1xf32>
    %cst_35 = arith.constant 3.200000e+01 : f32
    %69 = vector.broadcast %cst_35 : f32 to vector<16x1xf32>
    %70 = arith.divf %68, %69 : vector<16x1xf32>
    %71 = vector.broadcast %70 : vector<16x1xf32> to vector<16x32xf32>
    %72 = arith.subf %66, %71 : vector<16x32xf32>
    %73 = arith.mulf %72, %72 : vector<16x32xf32>
    %cst_36 = arith.constant dense<0.000000e+00> : vector<16xf32>
    %74 = vector.multi_reduction <add>, %73, %cst_36 [1] : vector<16x32xf32> to vector<16xf32>
    %75 = vector.shape_cast %74 : vector<16xf32> to vector<16x1xf32>
    %cst_37 = arith.constant 3.200000e+01 : f32
    %76 = vector.broadcast %cst_37 : f32 to vector<16x1xf32>
    %77 = arith.divf %75, %76 : vector<16x1xf32>
    %78 = vector.broadcast %70 : vector<16x1xf32> to vector<16x32xf32>
    %79 = arith.subf %66, %78 : vector<16x32xf32>
    %cst_38 = arith.constant 9.99999974E-6 : f32
    %80 = vector.broadcast %cst_38 : f32 to vector<16x1xf32>
    %81 = arith.addf %77, %80 : vector<16x1xf32>
    %82 = math.rsqrt %81 : vector<16x1xf32>
    %83 = vector.broadcast %82 : vector<16x1xf32> to vector<16x32xf32>
    %84 = arith.mulf %79, %83 : vector<16x32xf32>
    %c0_39 = arith.constant 0 : index
    %c0_40 = arith.constant 0 : index
    %c0_41 = arith.constant 0 : index
    %85 = vector.load %arg10[%c0_39, %c0_40, %c0_41] : memref<1x1x32xf32, #tpu.memory_space<vmem>>, vector<1x1x32xf32>
    %86 = vector.shape_cast %85 : vector<1x1x32xf32> to vector<1x32xf32>
    %87 = vector.broadcast %86 : vector<1x32xf32> to vector<16x32xf32>
    %88 = arith.mulf %84, %87 : vector<16x32xf32>
    %c0_42 = arith.constant 0 : index
    %c0_43 = arith.constant 0 : index
    %c0_44 = arith.constant 0 : index
    %89 = vector.load %arg11[%c0_42, %c0_43, %c0_44] : memref<1x1x32xf32, #tpu.memory_space<vmem>>, vector<1x1x32xf32>
    %90 = vector.shape_cast %89 : vector<1x1x32xf32> to vector<1x32xf32>
    %91 = vector.broadcast %90 : vector<1x32xf32> to vector<16x32xf32>
    %92 = arith.addf %88, %91 : vector<16x32xf32>
    %93 = vector.shape_cast %92 : vector<16x32xf32> to vector<2x8x32xf32>
    %c0_45 = arith.constant 0 : index
    %c0_46 = arith.constant 0 : index
    %c0_47 = arith.constant 0 : index
    %94 = vector.load %arg12[%c0_45, %c0_46, %c0_47] : memref<2x8x32xf32, #tpu.memory_space<vmem>>, vector<2x8x32xf32>
    tpu.vector_store %arg12[%c0_45, %c0_46, %c0_47], %93 {strides = array<i32>} : memref<2x8x32xf32, #tpu.memory_space<vmem>>, vector<2x8x32xf32>,
    return
  }
  func.func @transform_0(%arg0: i32, %arg1: i32) -> (i32, i32, i32) {
    %c0_i32 = arith.constant 0 : i32
    %c0_i32_0 = arith.constant 0 : i32
    %c0_i32_1 = arith.constant 0 : i32
    return %arg0, %c0_i32, %c0_i32_0 : i32, i32, i32
  }
  func.func @transform_1(%arg0: i32, %arg1: i32) -> (i32, i32, i32) {
    %c0_i32 = arith.constant 0 : i32
    %c0_i32_0 = arith.constant 0 : i32
    %c0_i32_1 = arith.constant 0 : i32
    return %arg1, %c0_i32, %c0_i32_0 : i32, i32, i32
  }
  func.func @transform_2(%arg0: i32, %arg1: i32) -> (i32, i32, i32) {
    %c0_i32 = arith.constant 0 : i32
    %c0_i32_0 = arith.constant 0 : i32
    %c0_i32_1 = arith.constant 0 : i32
    return %arg1, %c0_i32, %c0_i32_0 : i32, i32, i32
  }
  func.func @transform_3(%arg0: i32, %arg1: i32) -> (i32, i32, i32) {
    %c0_i32 = arith.constant 0 : i32
    %c0_i32_0 = arith.constant 0 : i32
    %c0_i32_1 = arith.constant 0 : i32
    return %arg1, %c0_i32, %c0_i32_0 : i32, i32, i32
  }
  func.func @transform_4(%arg0: i32, %arg1: i32) -> (i32, i32, i32) {
    %c0_i32 = arith.constant 0 : i32
    %c0_i32_0 = arith.constant 0 : i32
    %c0_i32_1 = arith.constant 0 : i32
    return %arg1, %c0_i32, %c0_i32_0 : i32, i32, i32
  }
  func.func @transform_5(%arg0: i32, %arg1: i32) -> (i32, i32, i32) {
    %c0_i32 = arith.constant 0 : i32
    %c0_i32_0 = arith.constant 0 : i32
    %c0_i32_1 = arith.constant 0 : i32
    return %arg1, %c0_i32, %c0_i32_0 : i32, i32, i32
  }
  func.func @transform_6(%arg0: i32, %arg1: i32) -> (i32, i32, i32) {
    %c0_i32 = arith.constant 0 : i32
    %c0_i32_0 = arith.constant 0 : i32
    %c0_i32_1 = arith.constant 0 : i32
    return %arg1, %c0_i32, %c0_i32_0 : i32, i32, i32
  }
  func.func @transform_7(%arg0: i32, %arg1: i32) -> (i32, i32, i32) {
    %c0_i32 = arith.constant 0 : i32
    %c0_i32_0 = arith.constant 0 : i32
    %c0_i32_1 = arith.constant 0 : i32
    return %arg1, %c0_i32, %c0_i32_0 : i32, i32, i32
  }
  func.func @transform_8(%arg0: i32, %arg1: i32) -> (i32, i32, i32) {
    %c0_i32 = arith.constant 0 : i32
    %c0_i32_0 = arith.constant 0 : i32
    %c0_i32_1 = arith.constant 0 : i32
    return %arg1, %c0_i32, %c0_i32_0 : i32, i32, i32
  }
  func.func @transform_9(%arg0: i32, %arg1: i32) -> (i32, i32, i32) {
    %c0_i32 = arith.constant 0 : i32
    %c0_i32_0 = arith.constant 0 : i32
    %c0_i32_1 = arith.constant 0 : i32
    return %arg1, %c0_i32, %c0_i32_0 : i32, i32, i32
  }
  func.func @transform_10(%arg0: i32, %arg1: i32) -> (i32, i32, i32) {
    %c0_i32 = arith.constant 0 : i32
    %c0_i32_0 = arith.constant 0 : i32
    %c0_i32_1 = arith.constant 0 : i32
    return %arg0, %c0_i32, %c0_i32_0 : i32, i32, i32
  }
}

</mosaic_0001>

<bundles_post_ra>
// kernel: tpu_custom_call.1
= control target key start
LH: loop header
LB: loop body
LE: loop exit
PB: predicated region body
PF: predicated region fallthrough
CT: control target
= control target key end

     0   :  { %s1401_s0 = inlined_call_operand.vmem [shape: f32[2,8,32], index: 0, kind: input, shape index: {}]   ;;  %s1402_s1 = inlined_call_operand.vmem [shape: f32[2,96,64], index: 1, kind: input, shape index: {}]   ;;  %s1403_s2 = inlined_call_operand.vmem [shape: f32[2,1,32], index: 2, kind: input, shape index: {}]   ;;  %s1404_s3 = inlined_call_operand.vmem [shape: f32[2,1,32], index: 3, kind: input, shape index: {}]   ;;  %s1405_s4 = inlined_call_operand.vmem [shape: f32[2,32,32], index: 4, kind: input, shape index: {}]   ;;  %s1406_s5 = inlined_call_operand.vmem [shape: f32[2,1,32], index: 5, kind: input, shape index: {}]   ;;  %s1407_s6 = inlined_call_operand.vmem [shape: f32[2,32,32], index: 6, kind: input, shape index: {}]   ;;  %s1408_s7 = inlined_call_operand.vmem [shape: f32[2,1,32], index: 7, kind: input, shape index: {}]   ;;  %s1409_s8 = inlined_call_operand.vmem [shape: f32[2,1,32], index: 8, kind: input, shape index: {}]   ;;  %s1410_s9 = inlined_call_operand.vmem [shape: f32[2,1,32], index: 9, kind: input, shape index: {}]   ;;  %s1411_s10 = inlined_call_operand.hbm [shape: f32[2,8,32], index: 10, kind: output, shape index: {}]  }
   0x1   :  { %1412 = sst [smem:[#allocation6_spill]] %s1402_s1 }
   0x2   :  { %1413 = sst [smem:[#allocation7_spill]] %s1405_s4 }
   0x3   :  { %15 = vsyncpa [#allocation3], 0  ;;  %s1233_s13 = smov 0   ;;  %s1235_s14 = smov 0  }
   0x4   :  { %s1237_s15 = smov 0  }
   0x5 LB: > { %s30_s17 = sadd.s32 1, %s1165_s14  ;;  %p1020_p1 = scmp.ge.s32.totalorder %s1169_s15, 1  ;;  %s1169_s15 = sphi %s1237_s15, %s21_s15   ;;  %s1165_s14 = sphi %s1235_s14, %s1422_s14   ;;  %s1161_s13 = sphi %s1233_s13, %s1421_s13  }
   0x6   : > { %p31_p0 = scmp.ge.s32.totalorder %s30_s17, 2  ;;  %p404_p2 = scmp.lt.s32.totalorder %s1169_s15, 3 }
   0x8   : > { %s1424_s17 = smov (%p31_p0, %s30_s17), 0  ;;  %p405_p3 = pnand %p1020_p1, %p404_p2 }
   0x9   : > { %1414 = sst [smem:[#allocation5_spill]] %s1424_s17  ;;  %p476_p4 = scmp.lt.s32.totalorder (!%p405_p3), %s1161_s13, 1 }
   0xa   : > { %408 = sbr.rel (%p405_p3) target bundleno = 1228 (0x4cc), region = 60  ;;  %s1415_s1 = sld [smem:[#allocation6_spill]] (!%p405_p3) }
   0xb   : > { %s1416_s4 = sld [smem:[#allocation7_spill]] (!%p405_p3)  ;;  %p1026_p5 = scmp.ne.s32.totalorder (!%p405_p3), %s1161_s13, 0 }
   0xf   : > { %s1252_s18 = scalar_select %p476_p4, %s1161_s13, 1 }
  0x11   : > { %s1053_s19 = smul.u32 96, %s1252_s18  ;;  %s1039_s26 = sshll.u32 %s1252_s18, 5 }
  0x12   : > { %s1272_s12 = scalar_lea.vmem %s1416_s4, %s1039_s26  ;;  %s494_s20 = scalar_lea.vmem %s1406_s5, %s1252_s18 }
  0x13   : > { %s1267_s29 = scalar_lea.vmem %s1415_s1, %s1053_s19  ;;  %s1281_s23 = scalar_lea.vmem %s1407_s6, %s1039_s26 }
  0x14   : > { %s502_s27 = scalar_lea.vmem %s1408_s7, %s1252_s18  ;;  %s505_s1 = scalar_lea.vmem %s1409_s8, %s1252_s18 }
  0x15   : > { %s508_s4 = scalar_lea.vmem %s1410_s9, %s1252_s18  ;;  %513 = sbr.rel (%p1026_p5) target bundleno = 29 (0x1d), region = 64 }
  0x1a   : > { %v514_v0 = vld [vmem:[%s1401_s0] sm:$0xff]  ;;  %vm516_vm0 = vcmask 261120   ;;  %v515_v1 = vld [vmem:[%s1401_s0 + $0x8] sm:$0xff] }
  0x1b   : > { %517 = vst.msk [vmem:[#allocation2] sm:$0xff] %vm516_vm0, %v514_v0 }
  0x1c   : > { %518 = vst.msk [vmem:[#allocation2 + $0x8] sm:$0xff] %vm516_vm0, %v515_v1 }
  0x1d PF: > { %vm527_vm1 = vcmask 1040384   ;;  %v579_v6 = vld [vmem:[%s1267_s29 + $0x58] sm:$0xff]  ;;  %v578_v7 = vld [vmem:[%s1267_s29 + $0x50] sm:$0xff]  ;;  %vm536_vm2 = vcmask 1046528   ;;  %v577_v12 = vld [vmem:[%s1267_s29 + $0x48] sm:$0xff]  ;;  %s1171_s13 = smov 32   ;;  %s1417_s24 = scalar_lea.vmem %s1403_s2, %s1252_s18 }
  0x1e   : > { %591 = vmatpush.msra.mxu0 %v579_v6  ;;  %1041 = vmatpush.msra.mxu3 %v579_v6  ;;  %v576_v17 = vld [vmem:[%s1267_s29 + $0x40] sm:$0xff]  ;;  %v575_v20 = vld [vmem:[%s1267_s29 + $0x38] sm:$0xff]  ;;  %vm549_vm3 = vcmask 1045504   ;;  %v574_v25 = vld [vmem:[%s1267_s29 + $0x30] sm:$0xff]  ;;  %s1172_s25 = smov 64   ;;  %vm562_vm4 = vcmask 261120   ;;  %s1418_s30 = scalar_lea.vmem %s1404_s3, %s1252_s18 }
  0x1f   : > { %v573_v26 = vld [vmem:[%s1267_s29 + $0x28] sm:$0xff]  ;;  %v572_v29 = vld [vmem:[%s1267_s29 + $0x20] sm:$0xff]  ;;  %v571_v30 = vld [vmem:[%s1267_s29 + $0x18] sm:$0xff]  ;;  %vm565_vm5 = vcmask 523264   ;;  %vm580_vm6 = vcmask 785408   ;;  %s1419_s18 = sadd.s32 4294967295, %s1169_s15  }
  0x20   : > { %592 = vmatpush.msra.mxu0 %v578_v7  ;;  %1042 = vmatpush.msra.mxu3 %v578_v7  ;;  %v570_v31 = vld [vmem:[%s1267_s29 + $0x10] sm:$0xff]  ;;  %v569_v32 = vld [vmem:[%s1267_s29 + $0x8] sm:$0xff]  ;;  %v568_v33 = vld [vmem:[%s1267_s29] sm:$0xff]  ;;  %s1173_s29 = smov 96   ;;  %p1058_p6 = scmp.eq.s32.totalorder %s1419_s18, 1 }
  0x21   : > { %s1177_s21 = smov 8  }
  0x22   : > { %v1303_v3 = vld [vmem:[#allocation2] sm:$0xff]  ;;  %593 = vmatpush.msra.mxu0 %v577_v12  ;;  %1043 = vmatpush.msra.mxu3 %v577_v12 }
  0x23   : > { %v1301_v2 = vld [vmem:[#allocation2 + $0x8] sm:$0xff]  ;;  %v523_v5 = vrot.slane %v1303_v3, 7 }
  0x24   : > { %v524_v4 = vrot.slane %v1301_v2, 7  ;;  %594 = vmatpush.msra.mxu0 %v576_v17  ;;  %1044 = vmatpush.msra.mxu3 %v576_v17 }
  0x25   : > { %v528_v10 = vsel %vm527_vm1, 0.0, %v523_v5  ;;  %v530_v11 = vsel %vm527_vm1, %v523_v5, 0.0 }
  0x26   : > { %v529_v8 = vsel %vm527_vm1, 0.0, %v524_v4  ;;  %v531_v9 = vsel %vm527_vm1, %v524_v4, 0.0  ;;  %v537_v15 = vrot.slane %v528_v10, 1  ;;  %v538_v16 = vrot.slane %v530_v11, 1  ;;  %595 = vmatpush.msra.mxu0 %v575_v20  ;;  %1045 = vmatpush.msra.mxu3 %v575_v20 }
  0x27   : > { %v540_v13 = vrot.slane %v529_v8, 1  ;;  %v541_v14 = vrot.slane %v531_v9, 1  ;;  %v553_v21 = vrot.slane %v529_v8, 2  ;;  %v554_v22 = vrot.slane %v531_v9, 2 }
  0x28   : > { %v539_v19 = vsel %vm536_vm2, %v537_v15, %v538_v16  ;;  %v550_v23 = vrot.slane %v528_v10, 2  ;;  %v551_v24 = vrot.slane %v530_v11, 2  ;;  %596 = vmatpush.msra.mxu0 %v574_v25  ;;  %1046 = vmatpush.msra.mxu3 %v574_v25  ;;  %v1174_v16 = vmov 32.0  }
  0x29   : > { %v542_v18 = vsel %vm536_vm2, %v540_v13, %v541_v14  ;;  %543 = vrot.lane.b32.xlu0 %v539_v19, %s1171_s13  ;;  %v555_v27 = vsel %vm549_vm3, %v553_v21, %v554_v22 }
  0x2a   : > { %545 = vrot.lane.b32.xlu1 %v542_v18, %s1171_s13  ;;  %v552_v28 = vsel %vm549_vm3, %v550_v23, %v551_v24  ;;  %597 = vmatpush.msra.mxu0 %v573_v26 }
  0x2b   : > { %1047 = vmatpush.msra.mxu3 %v573_v26 }
  0x2c   : > { %598 = vmatpush.msra.mxu0 %v572_v29 }
  0x2d   : > { %1048 = vmatpush.msra.mxu3 %v572_v29 }
  0x2e   : > { %599 = vmatpush.msra.mxu0 %v571_v30 }
  0x2f   : > { %1049 = vmatpush.msra.mxu3 %v571_v30 }
  0x30   : > { %600 = vmatpush.msra.mxu0 %v570_v31 }
  0x31   : > { %556 = vrot.lane.b32.xlu0 %v552_v28, %s1172_s25  ;;  %1050 = vmatpush.msra.mxu3 %v570_v31  ;;  %v726_v31 = vld [vmem:[%s1272_s12 + $0x18] sm:$0xff] }
  0x32   : > { %558 = vrot.lane.b32.xlu1 %v555_v27, %s1172_s25  ;;  %601 = vmatpush.msra.mxu0 %v569_v32 }
  0x33   : > { %1051 = vmatpush.msra.mxu3 %v569_v32  ;;  %749 = vmatpush.msra.mxu1 %v726_v31  ;;  %v725_v32 = vld [vmem:[%s1272_s12 + $0x10] sm:$0xff] }
  0x34   : > { %602 = vmatpush.msra.mxu0 %v568_v33 }
  0x35   : > { %1052 = vmatpush.msra.mxu3 %v568_v33  ;;  %750 = vmatpush.msra.mxu1 %v725_v32  ;;  %v724_v33 = vld [vmem:[%s1272_s12 + $0x8] sm:$0xff] }
  0x37   : > { %751 = vmatpush.msra.mxu1 %v724_v33 }
  0x9b   : > { %v544_v35 = vpop.permute.xlu0 %543 }
  0x9c   : > { %v546_v34 = vpop.permute.xlu1 %545  ;;  %v563_v37 = vsel %vm562_vm4, %v528_v10, %v544_v35 }
  0x9d   : > { %v564_v36 = vsel %vm562_vm4, %v529_v8, %v546_v34  ;;  %v723_v34 = vld [vmem:[%s1272_s12] sm:$0xff]  ;;  %s1176_s12 = smov 128  }
  0x9e   : > { %752 = vmatpush.msra.mxu1 %v723_v34 }
  0xa3   : > { %v557_v39 = vpop.permute.xlu0 %556 }
  0xa4   : > { %v559_v38 = vpop.permute.xlu1 %558  ;;  %v566_v40 = vsel %vm565_vm5, %v563_v37, %v557_v39 }
  0xa5   : > { %v567_v41 = vsel %vm565_vm5, %v564_v36, %v559_v38  ;;  %1027 = vmatmul.msk.f32.vlgmr.msra.gmra.mxu0 %vm580_vm6, %v566_v40  ;;  %v765_v38 = vld [vmem:[%s1281_s23 + $0x18] sm:$0xff] }
  0xa6   : > { %1028 = vmatmul.msk.f32.vlgmr.msra.gmra.mxu3 %vm580_vm6, %v567_v41  ;;  %788 = vmatpush.msra.mxu2 %v765_v38 }
 0x122   : > { %v604_v42 = vpop.f32.mrf.mxu0 }
 0x123   : > { %v1029_v43 = vmul.f32 -1.442695, %v604_v42 }
 0x125   : > { %1097 = vpow2.f32 %v1029_v43 }
 0x129   : > { %v607_v44 = vpop.f32.mrf.mxu3 }
 0x12a   : > { %v1030_v45 = vmul.f32 -1.442695, %v607_v44 }
 0x12b   : > { %v1098_v46 = vpop.eup %1097 }
 0x12c   : > { %1099 = vpow2.f32 %v1030_v45  ;;  %v616_v47 = vadd.f32 1.0, %v1098_v46 }
 0x12e   : > { %1101 = vrcp.f32 %v616_v47  ;;  %v629_v53 = vand.u32 2147483648, %v616_v47  ;;  %v627_v55 = vand.u32 2147483647, %v616_v47  ;;  %vm623_vm8 = vweird.f32 %v616_v47 }
 0x130   : > { %v630_v59 = vor.u32 1.1754944e-38, %v629_v53  ;;  %vm628_vm10 = vcmp.eq.f32.partialorder %v627_v55, 8.507059e+37 }
 0x132   : > { %v1100_v48 = vpop.eup %1099 }
 0x133   : > { %v617_v49 = vadd.f32 1.0, %v1100_v48 }
 0x134   : > { %v1102_v50 = vpop.eup %1101 }
 0x135   : > { %1103 = vrcp.f32 %v617_v49  ;;  %v619_v51 = vmul.f32 %v1102_v50, %v616_v47  ;;  %vm624_vm7 = vweird.f32 %v1102_v50  ;;  %v644_v0 = vand.u32 2147483648, %v617_v49 }
 0x136   : > { %vm625_vm9 = vmor %vm623_vm8, %vm624_vm7  ;;  %vm638_vm12 = vweird.f32 %v617_v49  ;;  %v642_v4 = vand.u32 2147483647, %v617_v49  ;;  %1105 = vrcp.f32 %v1174_v16 }
 0x137   : > { %v620_v52 = vsub.f32 1.0, %v619_v51  ;;  %v645_v6 = vor.u32 1.1754944e-38, %v644_v0  ;;  %v764_v0 = vld [vmem:[%s1281_s23 + $0x10] sm:$0xff] }
 0x138   : > { %vm643_vm14 = vcmp.eq.f32.partialorder %v642_v4, 8.507059e+37  ;;  %789 = vmatpush.msra.mxu2 %v764_v0  ;;  %v762_v4 = vld [vmem:[%s1281_s23] sm:$0xff] }
 0x139   : > { %v621_v54 = vmul.f32 %v1102_v50, %v620_v52 }
 0x13b   : > { %v1104_v56 = vpop.eup %1103  ;;  %v622_v57 = vadd.f32 %v1102_v50, %v621_v54  ;;  %v1092_v54 = vld [vmem:[%s1418_s30] ss:$0 sm:$0xff] }
 0x13c   : > { %v634_v58 = vmul.f32 %v1104_v56, %v617_v49  ;;  %vm639_vm11 = vweird.f32 %v1104_v56  ;;  %v1106_v17 = vpop.eup %1105 }
 0x13d   : > { %v626_v60 = vsel %vm625_vm9, %v1102_v50, %v622_v57  ;;  %vm640_vm13 = vmor %vm638_vm12, %vm639_vm11  ;;  %v667_v18 = vmul.f32 32.0, %v1106_v17  ;;  %vm671_vm15 = vweird.f32 %v1106_v17  ;;  %v1091_v50 = vld [vmem:[%s1417_s24] ss:$0 sm:$0xff] }
 0x13e   : > { %v635_v61 = vsub.f32 1.0, %v634_v58  ;;  %v631_v62 = vsel %vm628_vm10, %v630_v59, %v626_v60 }
 0x13f   : > { %650 = vrot.lane.b32.xlu2 %v631_v62, %s1173_s29  ;;  %v668_v19 = vsub.f32 1.0, %v667_v18 }
 0x140   : > { %v636_v63 = vmul.f32 %v1104_v56, %v635_v61 }
 0x141   : > { %v669_v20 = vmul.f32 %v1106_v17, %v668_v19 }
 0x142   : > { %v637_v1 = vadd.f32 %v1104_v56, %v636_v63 }
 0x143   : > { %v670_v21 = vadd.f32 %v1106_v17, %v669_v20 }
 0x144   : > { %v641_v5 = vsel %vm640_vm13, %v1104_v56, %v637_v1  ;;  %v763_v1 = vld [vmem:[%s1281_s23 + $0x8] sm:$0xff] }
 0x145   : > { %v646_v7 = vsel %vm643_vm14, %v645_v6, %v641_v5  ;;  %790 = vmatpush.msra.mxu2 %v763_v1  ;;  %v1093_v5 = vld [vmem:[%s494_s20] ss:$0 sm:$0xff] }
 0x147   : > { %652 = vrot.lane.b32.xlu2 %v646_v7, %s1173_s29  ;;  %791 = vmatpush.msra.mxu2 %v762_v4 }
 0x199   : > { %v651_v8 = vpop.permute.xlu2 %650 }
 0x19a   : > { %v656_v9 = vmul.f32 %v651_v8, %v604_v42 }
 0x19c   : > { %v658_v10 = vadd.f32 %v656_v9, %v1303_v3  ;;  %v1327_v3 = vsel %vm671_vm15, %v1106_v17, %v670_v21 }
 0x19e   : > { %v660_v11 = vsel %vm562_vm4, %v658_v10, 0.0 }
 0x19f   : > { %661 = vadd.xlane.f32.xlu0 %v660_v11 }
 0x1a1   : > { %v653_v12 = vpop.permute.xlu2 %652 }
 0x1a2   : > { %v657_v13 = vmul.f32 %v653_v12, %v607_v44  ;;  %v1094_v12 = vld [vmem:[%s502_s27] ss:$0 sm:$0xff] }
 0x1a4   : > { %v659_v14 = vadd.f32 %v657_v13, %v1301_v2 }
 0x1a6   : > { %v663_v15 = vsel %vm562_vm4, %v659_v14, 0.0 }
 0x1a7   : > { %664 = vadd.xlane.f32.xlu1 %v663_v15 }
 0x212   : > { %v662_v22 = vpop.xlane.xlu0 %661 }
 0x213   : > { %v673_v23 = vmul.f32 %v1327_v3, %v662_v22 }
 0x215   : > { %v675_v2 = vsub.f32 %v658_v10, %v673_v23 }
 0x217   : > { %v677_v24 = vmul.f32 %v675_v2, %v675_v2 }
 0x219   : > { %v679_v25 = vsel %vm562_vm4, %v677_v24, 0.0 }
 0x21a   : > { %680 = vadd.xlane.f32.xlu2 %v679_v25  ;;  %v665_v26 = vpop.xlane.xlu1 %664 }
 0x21b   : > { %v674_v27 = vmul.f32 %v1327_v3, %v665_v26 }
 0x21d   : > { %v676_v28 = vsub.f32 %v659_v14, %v674_v27 }
 0x21f   : > { %v678_v29 = vmul.f32 %v676_v28, %v676_v28 }
 0x221   : > { %v682_v30 = vsel %vm562_vm4, %v678_v29, 0.0 }
 0x222   : > { %683 = vadd.xlane.f32.xlu2 %v682_v30 }
 0x28d   : > { %v681_v35 = vpop.xlane.xlu2 %680 }
 0x28e   : > { %v685_v36 = vmul.f32 %v681_v35, %v1327_v3 }
 0x290   : > { %v687_v37 = vadd.f32 1e-05, %v685_v36 }
 0x292   : > { %1107 = vrsqrt.f32 %v687_v37  ;;  %vm695_vm1 = vweird.f32 %v687_v37 }
 0x295   : > { %v684_v39 = vpop.xlane.xlu2 %683 }
 0x296   : > { %v686_v40 = vmul.f32 %v684_v39, %v1327_v3 }
 0x298   : > { %v1108_v41 = vpop.eup %1107  ;;  %v688_v42 = vadd.f32 1e-05, %v686_v40 }
 0x299   : > { %v690_v43 = vmul.f32 %v1108_v41, %v687_v37  ;;  %vm696_vm0 = vweird.f32 %v1108_v41 }
 0x29a   : > { %1109 = vrsqrt.f32 %v688_v42  ;;  %vm697_vm2 = vmor %vm695_vm1, %vm696_vm0  ;;  %vm705_vm5 = vweird.f32 %v688_v42 }
 0x29b   : > { %v691_v44 = vmul.f32 %v1108_v41, %v690_v43 }
 0x29d   : > { %v692_v45 = vmul.f32 0.5, %v691_v44  ;;  %v1095_v44 = vld [vmem:[%s505_s1] ss:$0 sm:$0xff]  ;;  %s1175_s1 = smov [#allocation2]  }
 0x29e   : > { %s867_s13 = sshll.u32 %s1175_s1, 4  ;;  %s868_s13 = int_to_ptr.vmem [resolvable:$true] %s867_s13 }
 0x29f   : > { %v693_v46 = vsub.f32 1.5, %v692_v45 }
 0x2a0   : > { %v1110_v47 = vpop.eup %1109 }
 0x2a1   : > { %v694_v48 = vmul.f32 %v1108_v41, %v693_v46  ;;  %v700_v49 = vmul.f32 %v1110_v47, %v688_v42  ;;  %vm706_vm3 = vweird.f32 %v1110_v47  ;;  %v1096_v46 = vld [vmem:[%s508_s4] ss:$0 sm:$0xff]  ;;  %s869_s4 = sshll.u32 %s1411_s10, 4  ;;  %s870_s4 = int_to_ptr.hbm [resolvable:$true] %s869_s4 }
 0x2a2   : > { %vm707_vm6 = vmor %vm705_vm5, %vm706_vm3 }
 0x2a3   : > { %v698_v51 = vsel %vm697_vm2, %v1108_v41, %v694_v48  ;;  %v701_v52 = vmul.f32 %v1110_v47, %v700_v49 }
 0x2a4   : > { %v709_v53 = vmul.f32 %v698_v51, %v675_v2 }
 0x2a5   : > { %v702_v55 = vmul.f32 0.5, %v701_v52 }
 0x2a6   : > { %v715_v56 = vmul.f32 %v1091_v50, %v709_v53 }
 0x2a7   : > { %v703_v57 = vsub.f32 1.5, %v702_v55 }
 0x2a8   : > { %v721_v58 = vadd.f32 %v1092_v54, %v715_v56 }
 0x2a9   : > { %v704_v59 = vmul.f32 %v1110_v47, %v703_v57 }
 0x2aa   : > { %1031 = vmatmul.msk.f32.vlgmr.msra.gmra.mxu1 %vm562_vm4, %v721_v58 }
 0x2ab   : > { %v708_v60 = vsel %vm707_vm6, %v1110_v47, %v704_v59 }
 0x2ac   : > { %v710_v61 = vmul.f32 %v708_v60, %v676_v28 }
 0x2ae   : > { %v716_v62 = vmul.f32 %v1091_v50, %v710_v61 }
 0x2b0   : > { %v722_v63 = vadd.f32 %v1092_v54, %v716_v62 }
 0x2b2   : > { %1032 = vmatmul.msk.f32.gmra.mxu1 %vm562_vm4, %v722_v63 }
 0x327   : > { %v754_v6 = vpop.f32.mrf.mxu1 }
 0x328   : > { %v755_v7 = vadd.f32 %v1093_v5, %v754_v6 }
 0x32a   : > { %v760_v8 = vmax.f32 %v755_v7, 0.0 }
 0x32c   : > { %1033 = vmatmul.msk.f32.vlgmr.msra.gmra.mxu2 %vm562_vm4, %v760_v8 }
 0x32f   : > { %v757_v9 = vpop.f32.mrf.mxu1 }
 0x330   : > { %v758_v10 = vadd.f32 %v1093_v5, %v757_v9 }
 0x332   : > { %v761_v11 = vmax.f32 %v758_v10, 0.0 }
 0x334   : > { %1034 = vmatmul.msk.f32.gmra.mxu2 %vm562_vm4, %v761_v11 }
 0x3af   : > { %v793_v13 = vpop.f32.mrf.mxu2 }
 0x3b0   : > { %v794_v14 = vadd.f32 %v1094_v12, %v793_v13 }
 0x3b2   : > { %v799_v15 = vadd.f32 %v794_v14, %v721_v58 }
 0x3b4   : > { %v801_v16 = vsel %vm562_vm4, %v799_v15, 0.0 }
 0x3b5   : > { %802 = vadd.xlane.f32.xlu0 %v801_v16 }
 0x3b7   : > { %v796_v17 = vpop.f32.mrf.mxu2 }
 0x3b8   : > { %v797_v18 = vadd.f32 %v1094_v12, %v796_v17 }
 0x3ba   : > { %v800_v19 = vadd.f32 %v797_v18, %v722_v63 }
 0x3bc   : > { %v804_v20 = vsel %vm562_vm4, %v800_v19, 0.0 }
 0x3bd   : > { %805 = vadd.xlane.f32.xlu1 %v804_v20 }
 0x428   : > { %v803_v21 = vpop.xlane.xlu0 %802 }
 0x429   : > { %v807_v22 = vmul.f32 %v803_v21, %v1327_v3 }
 0x42b   : > { %v809_v23 = vsub.f32 %v799_v15, %v807_v22 }
 0x42d   : > { %v811_v2 = vmul.f32 %v809_v23, %v809_v23 }
 0x42f   : > { %v813_v24 = vsel %vm562_vm4, %v811_v2, 0.0 }
 0x430   : > { %814 = vadd.xlane.f32.xlu2 %v813_v24  ;;  %v806_v25 = vpop.xlane.xlu1 %805 }
 0x431   : > { %v808_v26 = vmul.f32 %v806_v25, %v1327_v3 }
 0x433   : > { %v810_v27 = vsub.f32 %v800_v19, %v808_v26 }
 0x435   : > { %v812_v28 = vmul.f32 %v810_v27, %v810_v27 }
 0x437   : > { %v816_v29 = vsel %vm562_vm4, %v812_v28, 0.0 }
 0x438   : > { %817 = vadd.xlane.f32.xlu0 %v816_v29 }
 0x4a3   : > { %v815_v30 = vpop.xlane.xlu2 %814 }
 0x4a4   : > { %v819_v31 = vmul.f32 %v815_v30, %v1327_v3 }
 0x4a6   : > { %v821_v32 = vadd.f32 1e-05, %v819_v31 }
 0x4a8   : > { %1111 = vrsqrt.f32 %v821_v32  ;;  %vm829_vm8 = vweird.f32 %v821_v32 }
 0x4ab   : > { %v818_v33 = vpop.xlane.xlu0 %817 }
 0x4ac   : > { %v820_v34 = vmul.f32 %v818_v33, %v1327_v3 }
 0x4ae   : > { %v1112_v35 = vpop.eup %1111  ;;  %v822_v36 = vadd.f32 1e-05, %v820_v34 }
 0x4af   : > { %v824_v37 = vmul.f32 %v1112_v35, %v821_v32  ;;  %vm830_vm7 = vweird.f32 %v1112_v35 }
 0x4b0   : > { %1113 = vrsqrt.f32 %v822_v36  ;;  %vm831_vm9 = vmor %vm829_vm8, %vm830_vm7  ;;  %vm839_vm11 = vweird.f32 %v822_v36 }
 0x4b1   : > { %v825_v38 = vmul.f32 %v1112_v35, %v824_v37 }
 0x4b3   : > { %v826_v39 = vmul.f32 0.5, %v825_v38 }
 0x4b5   : > { %v827_v40 = vsub.f32 1.5, %v826_v39 }
 0x4b6   : > { %v1114_v41 = vpop.eup %1113 }
 0x4b7   : > { %v828_v42 = vmul.f32 %v1112_v35, %v827_v40  ;;  %v834_v43 = vmul.f32 %v1114_v41, %v822_v36  ;;  %vm840_vm10 = vweird.f32 %v1114_v41 }
 0x4b8   : > { %vm841_vm12 = vmor %vm839_vm11, %vm840_vm10 }
 0x4b9   : > { %v832_v3 = vsel %vm831_vm9, %v1112_v35, %v828_v42  ;;  %v835_v45 = vmul.f32 %v1114_v41, %v834_v43 }
 0x4ba   : > { %v843_v47 = vmul.f32 %v832_v3, %v809_v23 }
 0x4bb   : > { %v836_v48 = vmul.f32 0.5, %v835_v45 }
 0x4bc   : > { %v849_v49 = vmul.f32 %v1095_v44, %v843_v47 }
 0x4bd   : > { %v837_v50 = vsub.f32 1.5, %v836_v48 }
 0x4be   : > { %v855_v51 = vadd.f32 %v1096_v46, %v849_v49 }
 0x4bf   : > { %v838_v52 = vmul.f32 %v1114_v41, %v837_v50 }
 0x4c0   : > { %857 = vst.msk [vmem:[#allocation2] sm:$0xff] %vm562_vm4, %v855_v51 }
 0x4c1   : > { %v842_v53 = vsel %vm841_vm12, %v1114_v41, %v838_v52 }
 0x4c2   : > { %v844_v54 = vmul.f32 %v842_v53, %v810_v27 }
 0x4c4   : > { %v850_v55 = vmul.f32 %v1095_v44, %v844_v54 }
 0x4c6   : > { %v856_v56 = vadd.f32 %v1096_v46, %v850_v55 }
 0x4c8   : > { %858 = vst.msk [vmem:[#allocation2 + $0x8] sm:$0xff] %vm562_vm4, %v856_v56 }
 0x4c9   : > { %1055 = dma.vmem_to_hbm [thread:$0]  (%p1058_p6), %s868_s13, 256, %s870_s4, [#allocation3], %s1176_s12, %s1176_s12, %s1177_s21  }
 0x4ca   : > { %1156 = dma.done.wait (%p1058_p6), [#allocation3], 256  }
 0x4cb   : > { %1158 = vsyncadd (%p1058_p6), [#allocation3], 4294967040 }
 0x4cc PF: > { %s21_s15 = sadd.s32 1, %s1169_s15   ;;  %s1420_s24 = sld [smem:[#allocation5_spill]] }
 0x4cd   : > { %p18_p7 = scmp.ge.s32.totalorder %s21_s15, 4   ;;  %s1421_s13 = smov %s1165_s14 }
 0x4cf   :  { %20 = sbr.rel (!%p18_p7) target bundleno = 5 (0x5), region = 119 }
 0x4d2   : > { %s1422_s14 = smov %s1420_s24 }
 0x4d4   :  { %886 = vsyncpa [#allocation3], 1 }
 0x4d5   :  { %888 = vsyncpa [#allocation3 + $0x1], 1 }

</bundles_post_ra>
